<compile_context>
chip_gen: v6e
topology: v6e:2x2x1
jax: 0.10.0
libtpu: 0.0.40
codegen_flags: <defaults>
</compile_context>

<pallas_src>
import functools
import math

import jax
import jax.numpy as jnp
from jax import lax
from jax.experimental import pallas as pl
from jax.experimental.pallas import tpu as pltpu

LANE = 128


def _gelu(x):
    # tanh-approximate GELU (PyTorch nn.GELU uses the exact erf form; the difference
    # is <1e-3 and tanh lowers cleanly to the TPU EUP). Used by kernel AND reference.
    return jax.nn.gelu(x, approximate=True)


def _round_up(n, m):
    return (n + m - 1) // m * m


def _ghost_kernel(init_c, new_c, l_true, act, has_gate, has_res, want_sums):
    """Fused GhostModule: 1x1 conv + BN (+GELU), depthwise-3 conv + BN (+GELU)."""

    def kernel(*refs):
        it = iter(refs)
        wp_ref = next(it)                               # (init_c, c_in)  1x1 conv weight
        sp_ref = next(it)                               # (init_c, 1)     BN scale (primary)
        bp_ref = next(it)                               # (init_c, 1)     BN bias  (primary)
        wd_ref = next(it)                               # (new_c, 3)      depthwise taps
        sd_ref = next(it)                               # (new_c, 1)      BN scale (cheap)
        bd_ref = next(it)                               # (new_c, 1)      BN bias  (cheap)
        x_ref = next(it)                                # (1, c_in, Lp)
        gate_ref = next(it) if has_gate else None       # (1, c_in, 1)    ECA gate
        res_ref = next(it) if has_res else None         # (1, init_c+new_c, Lp)
        o_ref = next(it)                                # (1, init_c+new_c, Lp)
        sum_ref = next(it) if want_sums else None       # (1, init_c+new_c, 1)

        x = x_ref[0]                                    # (c_in, Lp) f32
        lp = x.shape[-1]
        if has_gate:
            x = x * gate_ref[0]                         # apply ECA channel gate in-VMEM

        # ---- primary: 1x1 conv == channel matmul on the MXU, + BN (+ GELU) ----
        x1 = jnp.dot(wp_ref[...].astype(jnp.bfloat16),
                     x.astype(jnp.bfloat16),
                     preferred_element_type=jnp.float32)        # (init_c, Lp)
        x1 = x1 * sp_ref[...] + bp_ref[...]
        if act:
            x1 = _gelu(x1)
        col = lax.broadcasted_iota(jnp.int32, (init_c, lp), 1)
        x1 = jnp.where(col < l_true, x1, 0.0)           # keep padded tail exactly zero

        # ---- cheap op: depthwise 3-tap conv along L (zero padded), + BN (+ GELU) ----
        x_prev = jnp.where(col >= 1, pltpu.roll(x1, shift=1, axis=1), 0.0)
        x_next = jnp.where(col <= l_true - 2, pltpu.roll(x1, shift=lp - 1, axis=1), 0.0)
        x2 = wd_ref[:, 0:1] * x_prev + wd_ref[:, 1:2] * x1 + wd_ref[:, 2:3] * x_next
        x2 = x2 * sd_ref[...] + bd_ref[...]
        if act:
            x2 = _gelu(x2)
        x2 = jnp.where(col < l_true, x2, 0.0)

        # ---- write both ghost halves into one lane-dense output slab ----
        if has_res:
            o_ref[0, :init_c, :] = x1 + res_ref[0, :init_c, :]
            o_ref[0, init_c:, :] = x2 + res_ref[0, init_c:, :]
        else:
            o_ref[0, :init_c, :] = x1
            o_ref[0, init_c:, :] = x2

        if want_sums:                                   # per-channel L-sums for ECA pooling
            sum_ref[0, :init_c, :] = jnp.sum(x1, axis=-1, keepdims=True)
            sum_ref[0, init_c:, :] = jnp.sum(x2, axis=-1, keepdims=True)

    return kernel


def _ghost_module(x, wp, sp, bp, wd, sd, bd, *, act, l_true,
                  gate=None, residual=None, want_sums=False):
    """x: (B, c_in, Lp) with Lp % 128 == 0 and columns >= l_true already zero."""
    B, c_in, Lp = x.shape
    init_c = wp.shape[0]
    new_c = wd.shape[0]
    assert new_c == init_c, "GhostModule with ratio != 2 is not supported"
    out_tot = init_c + new_c

    has_gate = gate is not None
    has_res = residual is not None

    in_specs = [
        pl.BlockSpec((init_c, c_in), lambda b: (0, 0)),
        pl.BlockSpec((init_c, 1), lambda b: (0, 0)),
        pl.BlockSpec((init_c, 1), lambda b: (0, 0)),
        pl.BlockSpec((new_c, 3), lambda b: (0, 0)),
        pl.BlockSpec((new_c, 1), lambda b: (0, 0)),
        pl.BlockSpec((new_c, 1), lambda b: (0, 0)),
        pl.BlockSpec((1, c_in, Lp), lambda b: (b, 0, 0)),
    ]
    args = [wp, sp.reshape(init_c, 1), bp.reshape(init_c, 1),
            wd, sd.reshape(new_c, 1), bd.reshape(new_c, 1), x]
    if has_gate:
        in_specs.append(pl.BlockSpec((1, c_in, 1), lambda b: (b, 0, 0)))
        args.append(gate.reshape(B, c_in, 1))
    if has_res:
        assert residual.shape == (B, out_tot, Lp)
        in_specs.append(pl.BlockSpec((1, out_tot, Lp), lambda b: (b, 0, 0)))
        args.append(residual)

    out_shape = [jax.ShapeDtypeStruct((B, out_tot, Lp), jnp.float32)]
    out_specs = [pl.BlockSpec((1, out_tot, Lp), lambda b: (b, 0, 0))]
    if want_sums:
        out_shape.append(jax.ShapeDtypeStruct((B, out_tot, 1), jnp.float32))
        out_specs.append(pl.BlockSpec((1, out_tot, 1), lambda b: (b, 0, 0)))

    # Explicit VMEM budget: the auto-pipeline double-buffers each in/out block.
    per_step_bytes = 4 * (
        init_c * c_in + 2 * init_c + 5 * new_c
        + c_in * Lp
        + (c_in if has_gate else 0)
        + (out_tot * Lp if has_res else 0)
        + out_tot * Lp
        + (out_tot if want_sums else 0))
    vmem_limit = int(min(max(4 * per_step_bytes, 32 * 2**20), 64 * 2**20))

    outs = pl.pallas_call(
        _ghost_kernel(init_c, new_c, l_true, act, has_gate, has_res, want_sums),
        out_shape=out_shape,
        grid=(B,),
        in_specs=in_specs,
        out_specs=out_specs,
        compiler_params=pltpu.CompilerParams(
            dimension_semantics=("parallel",),
            vmem_limit_bytes=vmem_limit),
    )(*args)
    y = outs[0]
    sums = outs[1] if want_sums else None
    return y, sums


def shuffle_ghost_bottleneck(x, params, *, out_channels, use_se=True, shuffle=True):
    """Forward of ShuffleGhostBottleneck (stride=1, in_channels == out_channels)."""
    B, c_in, L = x.shape
    assert out_channels == c_in, (
        "only the identity-shortcut branch (stride=1, in_channels == out_channels) "
        "is implemented")
    hidden = params["w2_pw"].shape[1]

    lp = _round_up(L, LANE)
    xp = jnp.pad(x, ((0, 0), (0, 0), (0, lp - L))) if lp != L else x

    # Channel shuffle (groups=2) folded into the first 1x1 conv's column permutation.
    w1 = params["w1_pw"]
    if shuffle:
        assert c_in % 2 == 0
        g = 2
        perm = (jnp.arange(c_in) % g) * (c_in // g) + jnp.arange(c_in) // g
        w1 = w1[:, jnp.argsort(perm)]

    # Ghost module 1 (expand, GELU); also emits per-channel L-sums for ECA pooling.
    h, sums = _ghost_module(
        xp, w1, params["s1_pw"], params["b1_pw"],
        params["w1_dw"], params["s1_dw"], params["b1_dw"],
        act=True, l_true=L, want_sums=use_se)
    h = h[:, :hidden]          # GhostModule channel trim (no-op when hidden is even)

    gate = None
    if use_se:
        # ECA: 3-tap conv + sigmoid over the pooled (B, hidden) vector.  O(B*hidden)
        # work, left to XLA; the gate is applied inside ghost-module 2's kernel so
        # the hidden tensor is never re-read / re-written for the attention scaling.
        m = sums[:, :hidden, 0] / float(L)
        mp = jnp.pad(m, ((0, 0), (1, 1)))
        w_eca = params["w_eca"]
        conv = w_eca[0] * mp[:, :-2] + w_eca[1] * mp[:, 1:-1] + w_eca[2] * mp[:, 2:]
        gate = jax.nn.sigmoid(conv)                    # (B, hidden)

    # Ghost module 2 (project, no activation); ECA gate + residual add fused in.
    init2 = params["w2_pw"].shape[0]
    new2 = params["w2_dw"].shape[0]
    fuse_res = (init2 + new2 == out_channels)
    y, _ = _ghost_module(
        h, params["w2_pw"], params["s2_pw"], params["b2_pw"],
        params["w2_dw"], params["s2_dw"], params["b2_dw"],
        act=False, l_true=L, gate=gate,
        residual=xp if fuse_res else None)
    y = y[:, :out_channels, :L]
    if not fuse_res:
        y = y + x              # odd out_channels: un-fused residual fallback
    return y


# ----------------------------- pure-JAX reference ------------------------------

def _bn(y, s, b):
    return y * s[None, :, None] + b[None, :, None]


def _pw_conv_ref(w, x):
    # 1x1 Conv1d as a bf16 x bf16 -> f32 channel contraction (same dtype path as
    # the kernel's MXU matmul, so the comparison tolerance can stay tight).
    return jnp.einsum("oc,bcl->bol", w.astype(jnp.bfloat16), x.astype(jnp.bfloat16),
                      preferred_element_type=jnp.float32)


def _dwconv3_ref(x, w):
    xp = jnp.pad(x, ((0, 0), (0, 0), (1, 1)))
    return (w[None, :, 0:1] * xp[:, :, :-2]
            + w[None, :, 1:2] * xp[:, :, 1:-1]
            + w[None, :, 2:3] * xp[:, :, 2:])


def reference_forward(x, p, *, out_channels, use_se=True, shuffle=True):
    """Direct transcription of the PyTorch forward (eval-mode BN folded)."""
    B, C, L = x.shape
    hidden = p["w2_pw"].shape[1]
    h = x
    if shuffle:
        g = 2
        h = h.reshape(B, g, C // g, L).transpose(0, 2, 1, 3).reshape(B, C, L)
    # GhostModule(in, hidden, act=True)
    x1 = _gelu(_bn(_pw_conv_ref(p["w1_pw"], h), p["s1_pw"], p["b1_pw"]))
    x2 = _gelu(_bn(_dwconv3_ref(x1, p["w1_dw"]), p["s1_dw"], p["b1_dw"]))
    hid = jnp.concatenate([x1, x2], axis=1)[:, :hidden]
    # ECALayer
    if use_se:
        m = hid.mean(axis=-1)
        mp = jnp.pad(m, ((0, 0), (1, 1)))
        w = p["w_eca"]
        conv = w[0] * mp[:, :-2] + w[1] * mp[:, 1:-1] + w[2] * mp[:, 2:]
        hid = hid * jax.nn.sigmoid(conv)[:, :, None]
    # GhostModule(hidden, out, act=False)
    y1 = _bn(_pw_conv_ref(p["w2_pw"], hid), p["s2_pw"], p["b2_pw"])
    y2 = _bn(_dwconv3_ref(y1, p["w2_dw"]), p["s2_dw"], p["b2_dw"])
    y = jnp.concatenate([y1, y2], axis=1)[:, :out_channels]
    return y + x               # identity shortcut (in == out, stride == 1)


if __name__ == "__main__":
    # Small shapes; L is deliberately not a multiple of 128 to exercise the
    # lane-padding / masking path.  Channel counts are multiples of 8.
    B, C, L = 2, 16, 96
    hidden_ratio = 2
    hidden = hidden_ratio * C
    out_channels = C                              # identity-shortcut branch
    init1 = math.ceil(hidden / 2)
    new1 = init1
    init2 = math.ceil(out_channels / 2)
    new2 = init2

    key = jax.random.PRNGKey(0)
    keys = jax.random.split(key, 16)

    def conv_init(k, shape, fan_in):
        bound = 1.0 / math.sqrt(fan_in)
        return jax.random.uniform(k, shape, jnp.float32, -bound, bound)

    # eval-mode BatchNorm folded to per-channel (scale, bias)
    def bn_init(ks_, kb_, n):
        return (1.0 + 0.2 * jax.random.normal(ks_, (n,), jnp.float32),
                0.2 * jax.random.normal(kb_, (n,), jnp.float32))

    s1_pw, b1_pw = bn_init(keys[1], keys[2], init1)
    s1_dw, b1_dw = bn_init(keys[4], keys[5], new1)
    s2_pw, b2_pw = bn_init(keys[8], keys[9], init2)
    s2_dw, b2_dw = bn_init(keys[11], keys[12], new2)

    params = {
        "w1_pw": conv_init(keys[0], (init1, C), C),
        "s1_pw": s1_pw, "b1_pw": b1_pw,
        "w1_dw": conv_init(keys[3], (new1, 3), 3),
        "s1_dw": s1_dw, "b1_dw": b1_dw,
        "w_eca": conv_init(keys[6], (3,), 3),
        "w2_pw": conv_init(keys[7], (init2, hidden), hidden),
        "s2_pw": s2_pw, "b2_pw": b2_pw,
        "w2_dw": conv_init(keys[10], (new2, 3), 3),
        "s2_dw": s2_dw, "b2_dw": b2_dw,
    }

    x = jax.random.normal(keys[13], (B, C, L), jnp.float32)

    fwd = jax.jit(functools.partial(
        shuffle_ghost_bottleneck, out_channels=out_channels, use_se=True, shuffle=True))
    out = jax.block_until_ready(fwd(x, params))

    ref = jax.block_until_ready(
        reference_forward(x, params, out_channels=out_channels, use_se=True, shuffle=True))

    assert out.shape == (B, out_channels, L)
    # Tolerance covers f32 accumulation-order differences of the bf16 MXU matmuls
    # (same contraction dtype on both sides) plus bf16 re-rounding of intermediates.
    assert jnp.allclose(out, ref, atol=5e-3, rtol=5e-3), (
        "mismatch vs reference: max abs err = "
        + str(float(jnp.max(jnp.abs(out - ref)))))

    print("KERNEL_OK")
</pallas_src>

<mosaic_0001>
module attributes {stable_mosaic.version = 11 : i64} {
  func.func @kernel(%arg0: i32, %arg1: memref<16x16xf32, #tpu.memory_space<vmem>>, %arg2: memref<16x1xf32, #tpu.memory_space<vmem>>, %arg3: memref<16x1xf32, #tpu.memory_space<vmem>>, %arg4: memref<16x3xf32, #tpu.memory_space<vmem>>, %arg5: memref<16x1xf32, #tpu.memory_space<vmem>>, %arg6: memref<16x1xf32, #tpu.memory_space<vmem>>, %arg7: memref<1x16x128xf32, #tpu.memory_space<vmem>>, %arg8: memref<1x32x128xf32, #tpu.memory_space<vmem>>, %arg9: memref<1x32x1xf32, #tpu.memory_space<vmem>>) attributes {dimension_semantics = [#tpu.dimension_semantics<parallel>], iteration_bounds = array<i64: 2>, scalar_prefetch = 0 : i64, scratch_operands = 0 : i64, tpu.core_type = #tpu.core_type<tc>, window_params = [{pipeline_mode = #tpu.pipeline_mode<synchronous>, transform_indices = @transform_0, window_bounds = array<i64: 16, 16>}, {pipeline_mode = #tpu.pipeline_mode<synchronous>, transform_indices = @transform_1, window_bounds = array<i64: 16, 1>}, {pipeline_mode = #tpu.pipeline_mode<synchronous>, transform_indices = @transform_2, window_bounds = array<i64: 16, 1>}, {pipeline_mode = #tpu.pipeline_mode<synchronous>, transform_indices = @transform_3, window_bounds = array<i64: 16, 3>}, {pipeline_mode = #tpu.pipeline_mode<synchronous>, transform_indices = @transform_4, window_bounds = array<i64: 16, 1>}, {pipeline_mode = #tpu.pipeline_mode<synchronous>, transform_indices = @transform_5, window_bounds = array<i64: 16, 1>}, {transform_indices = @transform_6, window_bounds = array<i64: 1, 16, 128>}, {transform_indices = @transform_7, window_bounds = array<i64: 1, 32, 128>}, {transform_indices = @transform_8, window_bounds = array<i64: 1, 32, 1>}]} {
    %c0 = arith.constant 0 : index
    %c0_0 = arith.constant 0 : index
    %c0_1 = arith.constant 0 : index
    %0 = vector.load %arg7[%c0, %c0_0, %c0_1] : memref<1x16x128xf32, #tpu.memory_space<vmem>>, vector<1x16x128xf32>
    %1 = vector.shape_cast %0 : vector<1x16x128xf32> to vector<16x128xf32>
    %c0_2 = arith.constant 0 : index
    %c0_3 = arith.constant 0 : index
    %2 = vector.load %arg1[%c0_2, %c0_3] : memref<16x16xf32, #tpu.memory_space<vmem>>, vector<16x16xf32>
    %3 = arith.truncf %2 : vector<16x16xf32> to vector<16x16xbf16>
    %4 = arith.truncf %1 : vector<16x128xf32> to vector<16x128xbf16>
    %cst = arith.constant dense<0.000000e+00> : vector<16x128xf32>
    %5 = tpu.matmul %3, %4, %cst {dimension_numbers = #tpu.dot_dimension_numbers<[1], [0], [0], [1], [0, 0, 1, 1], [], []>} : vector<16x16xbf16>, vector<16x128xbf16>, vector<16x128xf32> -> vector<16x128xf32>
    %c0_4 = arith.constant 0 : index
    %c0_5 = arith.constant 0 : index
    %6 = vector.load %arg2[%c0_4, %c0_5] : memref<16x1xf32, #tpu.memory_space<vmem>>, vector<16x1xf32>
    %7 = vector.broadcast %6 : vector<16x1xf32> to vector<16x128xf32>
    %8 = arith.mulf %5, %7 : vector<16x128xf32>
    %c0_6 = arith.constant 0 : index
    %c0_7 = arith.constant 0 : index
    %9 = vector.load %arg3[%c0_6, %c0_7] : memref<16x1xf32, #tpu.memory_space<vmem>>, vector<16x1xf32>
    %10 = vector.broadcast %9 : vector<16x1xf32> to vector<16x128xf32>
    %11 = arith.addf %8, %10 : vector<16x128xf32>
    %12 = arith.mulf %11, %11 : vector<16x128xf32>
    %13 = arith.mulf %11, %12 : vector<16x128xf32>
    %cst_8 = arith.constant 4.471500e-02 : f32
    %14 = vector.broadcast %cst_8 : f32 to vector<16x128xf32>
    %15 = arith.mulf %14, %13 : vector<16x128xf32>
    %16 = arith.addf %11, %15 : vector<16x128xf32>
    %cst_9 = arith.constant 0.797884583 : f32
    %17 = vector.broadcast %cst_9 : f32 to vector<16x128xf32>
    %18 = arith.mulf %17, %16 : vector<16x128xf32>
    %19 = math.tanh %18 : vector<16x128xf32>
    %cst_10 = arith.constant 1.000000e+00 : f32
    %20 = vector.broadcast %cst_10 : f32 to vector<16x128xf32>
    %21 = arith.addf %20, %19 : vector<16x128xf32>
    %cst_11 = arith.constant 5.000000e-01 : f32
    %22 = vector.broadcast %cst_11 : f32 to vector<16x128xf32>
    %23 = arith.mulf %22, %21 : vector<16x128xf32>
    %24 = arith.mulf %11, %23 : vector<16x128xf32>
    %25 = tpu.iota {dimensions = array<i32: 1>} : vector<16x128xi32>
    %c96_i32 = arith.constant 96 : i32
    %26 = vector.broadcast %c96_i32 : i32 to vector<16x128xi32>
    %27 = arith.cmpi slt, %25, %26 : vector<16x128xi32>
    %cst_12 = arith.constant 0.000000e+00 : f32
    %28 = vector.broadcast %cst_12 : f32 to vector<16x128xf32>
    %29 = arith.select %27, %24, %28 : vector<16x128xi1>, vector<16x128xf32>
    %c1_i32 = arith.constant 1 : i32
    %30 = vector.broadcast %c1_i32 : i32 to vector<16x128xi32>
    %31 = arith.cmpi sge, %25, %30 : vector<16x128xi32>
    %c1_i32_13 = arith.constant 1 : i32
    %32 = tpu.dynamic_rotate %29 by %c1_i32_13 dim 1 : vector<16x128xf32>, i32 -> vector<16x128xf32>
    %cst_14 = arith.constant 0.000000e+00 : f32
    %33 = vector.broadcast %cst_14 : f32 to vector<16x128xf32>
    %34 = arith.select %31, %32, %33 : vector<16x128xi1>, vector<16x128xf32>
    %c94_i32 = arith.constant 94 : i32
    %35 = vector.broadcast %c94_i32 : i32 to vector<16x128xi32>
    %36 = arith.cmpi sle, %25, %35 : vector<16x128xi32>
    %c127_i32 = arith.constant 127 : i32
    %37 = tpu.dynamic_rotate %29 by %c127_i32 dim 1 : vector<16x128xf32>, i32 -> vector<16x128xf32>
    %cst_15 = arith.constant 0.000000e+00 : f32
    %38 = vector.broadcast %cst_15 : f32 to vector<16x128xf32>
    %39 = arith.select %36, %37, %38 : vector<16x128xi1>, vector<16x128xf32>
    %c0_16 = arith.constant 0 : index
    %c0_17 = arith.constant 0 : index
    %40 = vector.load %arg4[%c0_16, %c0_17] : memref<16x3xf32, #tpu.memory_space<vmem>>, vector<16x1xf32>
    %41 = vector.broadcast %40 : vector<16x1xf32> to vector<16x128xf32>
    %42 = arith.mulf %41, %34 : vector<16x128xf32>
    %c0_18 = arith.constant 0 : index
    %c1 = arith.constant 1 : index
    %43 = vector.load %arg4[%c0_18, %c1] : memref<16x3xf32, #tpu.memory_space<vmem>>, vector<16x1xf32>
    %44 = vector.broadcast %43 : vector<16x1xf32> to vector<16x128xf32>
    %45 = arith.mulf %44, %29 : vector<16x128xf32>
    %46 = arith.addf %42, %45 : vector<16x128xf32>
    %c0_19 = arith.constant 0 : index
    %c2 = arith.constant 2 : index
    %47 = vector.load %arg4[%c0_19, %c2] : memref<16x3xf32, #tpu.memory_space<vmem>>, vector<16x1xf32>
    %48 = vector.broadcast %47 : vector<16x1xf32> to vector<16x128xf32>
    %49 = arith.mulf %48, %39 : vector<16x128xf32>
    %50 = arith.addf %46, %49 : vector<16x128xf32>
    %c0_20 = arith.constant 0 : index
    %c0_21 = arith.constant 0 : index
    %51 = vector.load %arg5[%c0_20, %c0_21] : memref<16x1xf32, #tpu.memory_space<vmem>>, vector<16x1xf32>
    %52 = vector.broadcast %51 : vector<16x1xf32> to vector<16x128xf32>
    %53 = arith.mulf %50, %52 : vector<16x128xf32>
    %c0_22 = arith.constant 0 : index
    %c0_23 = arith.constant 0 : index
    %54 = vector.load %arg6[%c0_22, %c0_23] : memref<16x1xf32, #tpu.memory_space<vmem>>, vector<16x1xf32>
    %55 = vector.broadcast %54 : vector<16x1xf32> to vector<16x128xf32>
    %56 = arith.addf %53, %55 : vector<16x128xf32>
    %57 = arith.mulf %56, %56 : vector<16x128xf32>
    %58 = arith.mulf %56, %57 : vector<16x128xf32>
    %cst_24 = arith.constant 4.471500e-02 : f32
    %59 = vector.broadcast %cst_24 : f32 to vector<16x128xf32>
    %60 = arith.mulf %59, %58 : vector<16x128xf32>
    %61 = arith.addf %56, %60 : vector<16x128xf32>
    %cst_25 = arith.constant 0.797884583 : f32
    %62 = vector.broadcast %cst_25 : f32 to vector<16x128xf32>
    %63 = arith.mulf %62, %61 : vector<16x128xf32>
    %64 = math.tanh %63 : vector<16x128xf32>
    %cst_26 = arith.constant 1.000000e+00 : f32
    %65 = vector.broadcast %cst_26 : f32 to vector<16x128xf32>
    %66 = arith.addf %65, %64 : vector<16x128xf32>
    %cst_27 = arith.constant 5.000000e-01 : f32
    %67 = vector.broadcast %cst_27 : f32 to vector<16x128xf32>
    %68 = arith.mulf %67, %66 : vector<16x128xf32>
    %69 = arith.mulf %56, %68 : vector<16x128xf32>
    %c96_i32_28 = arith.constant 96 : i32
    %70 = vector.broadcast %c96_i32_28 : i32 to vector<16x128xi32>
    %71 = arith.cmpi slt, %25, %70 : vector<16x128xi32>
    %cst_29 = arith.constant 0.000000e+00 : f32
    %72 = vector.broadcast %cst_29 : f32 to vector<16x128xf32>
    %73 = arith.select %71, %69, %72 : vector<16x128xi1>, vector<16x128xf32>
    %c0_30 = arith.constant 0 : index
    %c0_31 = arith.constant 0 : index
    %c0_32 = arith.constant 0 : index
    %74 = vector.load %arg8[%c0_30, %c0_31, %c0_32] : memref<1x32x128xf32, #tpu.memory_space<vmem>>, vector<1x16x128xf32>
    %75 = vector.shape_cast %74 : vector<1x16x128xf32> to vector<16x128xf32>
    %76 = vector.shape_cast %29 : vector<16x128xf32> to vector<1x16x128xf32>
    tpu.vector_store %arg8[%c0_30, %c0_31, %c0_32], %76 {strides = array<i32>} : memref<1x32x128xf32, #tpu.memory_space<vmem>>, vector<1x16x128xf32>,
    %c0_33 = arith.constant 0 : index
    %c16 = arith.constant 16 : index
    %c0_34 = arith.constant 0 : index
    %77 = vector.load %arg8[%c0_33, %c16, %c0_34] : memref<1x32x128xf32, #tpu.memory_space<vmem>>, vector<1x16x128xf32>
    %78 = vector.shape_cast %77 : vector<1x16x128xf32> to vector<16x128xf32>
    %79 = vector.shape_cast %73 : vector<16x128xf32> to vector<1x16x128xf32>
    tpu.vector_store %arg8[%c0_33, %c16, %c0_34], %79 {strides = array<i32>} : memref<1x32x128xf32, #tpu.memory_space<vmem>>, vector<1x16x128xf32>,
    %cst_35 = arith.constant dense<0.000000e+00> : vector<16xf32>
    %80 = vector.multi_reduction <add>, %29, %cst_35 [1] : vector<16x128xf32> to vector<16xf32>
    %81 = vector.shape_cast %80 : vector<16xf32> to vector<16x1xf32>
    %c0_36 = arith.constant 0 : index
    %c0_37 = arith.constant 0 : index
    %c0_38 = arith.constant 0 : index
    %82 = vector.load %arg9[%c0_36, %c0_37, %c0_38] : memref<1x32x1xf32, #tpu.memory_space<vmem>>, vector<1x16x1xf32>
    %83 = vector.shape_cast %82 : vector<1x16x1xf32> to vector<16x1xf32>
    %84 = vector.shape_cast %81 : vector<16x1xf32> to vector<1x16x1xf32>
    tpu.vector_store %arg9[%c0_36, %c0_37, %c0_38], %84 {strides = array<i32>} : memref<1x32x1xf32, #tpu.memory_space<vmem>>, vector<1x16x1xf32>,
    %cst_39 = arith.constant dense<0.000000e+00> : vector<16xf32>
    %85 = vector.multi_reduction <add>, %73, %cst_39 [1] : vector<16x128xf32> to vector<16xf32>
    %86 = vector.shape_cast %85 : vector<16xf32> to vector<16x1xf32>
    %c0_40 = arith.constant 0 : index
    %c16_41 = arith.constant 16 : index
    %c0_42 = arith.constant 0 : index
    %87 = vector.load %arg9[%c0_40, %c16_41, %c0_42] : memref<1x32x1xf32, #tpu.memory_space<vmem>>, vector<1x16x1xf32>
    %88 = vector.shape_cast %87 : vector<1x16x1xf32> to vector<16x1xf32>
    %89 = vector.shape_cast %86 : vector<16x1xf32> to vector<1x16x1xf32>
    tpu.vector_store %arg9[%c0_40, %c16_41, %c0_42], %89 {strides = array<i32>} : memref<1x32x1xf32, #tpu.memory_space<vmem>>, vector<1x16x1xf32>,
    return
  }
  func.func @transform_0(%arg0: i32) -> (i32, i32) {
    %c0_i32 = arith.constant 0 : i32
    %c0_i32_0 = arith.constant 0 : i32
    %c0_i32_1 = arith.constant 0 : i32
    return %c0_i32, %c0_i32_0 : i32, i32
  }
  func.func @transform_1(%arg0: i32) -> (i32, i32) {
    %c0_i32 = arith.constant 0 : i32
    %c0_i32_0 = arith.constant 0 : i32
    %c0_i32_1 = arith.constant 0 : i32
    return %c0_i32, %c0_i32_0 : i32, i32
  }
  func.func @transform_2(%arg0: i32) -> (i32, i32) {
    %c0_i32 = arith.constant 0 : i32
    %c0_i32_0 = arith.constant 0 : i32
    %c0_i32_1 = arith.constant 0 : i32
    return %c0_i32, %c0_i32_0 : i32, i32
  }
  func.func @transform_3(%arg0: i32) -> (i32, i32) {
    %c0_i32 = arith.constant 0 : i32
    %c0_i32_0 = arith.constant 0 : i32
    %c0_i32_1 = arith.constant 0 : i32
    return %c0_i32, %c0_i32_0 : i32, i32
  }
  func.func @transform_4(%arg0: i32) -> (i32, i32) {
    %c0_i32 = arith.constant 0 : i32
    %c0_i32_0 = arith.constant 0 : i32
    %c0_i32_1 = arith.constant 0 : i32
    return %c0_i32, %c0_i32_0 : i32, i32
  }
  func.func @transform_5(%arg0: i32) -> (i32, i32) {
    %c0_i32 = arith.constant 0 : i32
    %c0_i32_0 = arith.constant 0 : i32
    %c0_i32_1 = arith.constant 0 : i32
    return %c0_i32, %c0_i32_0 : i32, i32
  }
  func.func @transform_6(%arg0: i32) -> (i32, i32, i32) {
    %c0_i32 = arith.constant 0 : i32
    %c0_i32_0 = arith.constant 0 : i32
    %c0_i32_1 = arith.constant 0 : i32
    return %arg0, %c0_i32, %c0_i32_0 : i32, i32, i32
  }
  func.func @transform_7(%arg0: i32) -> (i32, i32, i32) {
    %c0_i32 = arith.constant 0 : i32
    %c0_i32_0 = arith.constant 0 : i32
    %c0_i32_1 = arith.constant 0 : i32
    return %arg0, %c0_i32, %c0_i32_0 : i32, i32, i32
  }
  func.func @transform_8(%arg0: i32) -> (i32, i32, i32) {
    %c0_i32 = arith.constant 0 : i32
    %c0_i32_0 = arith.constant 0 : i32
    %c0_i32_1 = arith.constant 0 : i32
    return %arg0, %c0_i32, %c0_i32_0 : i32, i32, i32
  }
}

module attributes {stable_mosaic.version = 11 : i64} {
  func.func @kernel(%arg0: i32, %arg1: memref<8x32xf32, #tpu.memory_space<vmem>>, %arg2: memref<8x1xf32, #tpu.memory_space<vmem>>, %arg3: memref<8x1xf32, #tpu.memory_space<vmem>>, %arg4: memref<8x3xf32, #tpu.memory_space<vmem>>, %arg5: memref<8x1xf32, #tpu.memory_space<vmem>>, %arg6: memref<8x1xf32, #tpu.memory_space<vmem>>, %arg7: memref<1x32x128xf32, #tpu.memory_space<vmem>>, %arg8: memref<1x32x1xf32, #tpu.memory_space<vmem>>, %arg9: memref<1x16x128xf32, #tpu.memory_space<vmem>>, %arg10: memref<1x16x128xf32, #tpu.memory_space<vmem>>) attributes {dimension_semantics = [#tpu.dimension_semantics<parallel>], iteration_bounds = array<i64: 2>, scalar_prefetch = 0 : i64, scratch_operands = 0 : i64, tpu.core_type = #tpu.core_type<tc>, window_params = [{pipeline_mode = #tpu.pipeline_mode<synchronous>, transform_indices = @transform_0, window_bounds = array<i64: 8, 32>}, {pipeline_mode = #tpu.pipeline_mode<synchronous>, transform_indices = @transform_1, window_bounds = array<i64: 8, 1>}, {pipeline_mode = #tpu.pipeline_mode<synchronous>, transform_indices = @transform_2, window_bounds = array<i64: 8, 1>}, {pipeline_mode = #tpu.pipeline_mode<synchronous>, transform_indices = @transform_3, window_bounds = array<i64: 8, 3>}, {pipeline_mode = #tpu.pipeline_mode<synchronous>, transform_indices = @transform_4, window_bounds = array<i64: 8, 1>}, {pipeline_mode = #tpu.pipeline_mode<synchronous>, transform_indices = @transform_5, window_bounds = array<i64: 8, 1>}, {transform_indices = @transform_6, window_bounds = array<i64: 1, 32, 128>}, {transform_indices = @transform_7, window_bounds = array<i64: 1, 32, 1>}, {transform_indices = @transform_8, window_bounds = array<i64: 1, 16, 128>}, {transform_indices = @transform_9, window_bounds = array<i64: 1, 16, 128>}]} {
    %c0 = arith.constant 0 : index
    %c0_0 = arith.constant 0 : index
    %c0_1 = arith.constant 0 : index
    %0 = vector.load %arg7[%c0, %c0_0, %c0_1] : memref<1x32x128xf32, #tpu.memory_space<vmem>>, vector<1x32x128xf32>
    %1 = vector.shape_cast %0 : vector<1x32x128xf32> to vector<32x128xf32>
    %c0_2 = arith.constant 0 : index
    %c0_3 = arith.constant 0 : index
    %c0_4 = arith.constant 0 : index
    %2 = vector.load %arg8[%c0_2, %c0_3, %c0_4] : memref<1x32x1xf32, #tpu.memory_space<vmem>>, vector<1x32x1xf32>
    %3 = vector.shape_cast %2 : vector<1x32x1xf32> to vector<32x1xf32>
    %4 = vector.broadcast %3 : vector<32x1xf32> to vector<32x128xf32>
    %5 = arith.mulf %1, %4 : vector<32x128xf32>
    %c0_5 = arith.constant 0 : index
    %c0_6 = arith.constant 0 : index
    %6 = vector.load %arg1[%c0_5, %c0_6] : memref<8x32xf32, #tpu.memory_space<vmem>>, vector<8x32xf32>
    %7 = arith.truncf %6 : vector<8x32xf32> to vector<8x32xbf16>
    %8 = arith.truncf %5 : vector<32x128xf32> to vector<32x128xbf16>
    %cst = arith.constant dense<0.000000e+00> : vector<8x128xf32>
    %9 = tpu.matmul %7, %8, %cst {dimension_numbers = #tpu.dot_dimension_numbers<[1], [0], [0], [1], [0, 0, 1, 1], [], []>} : vector<8x32xbf16>, vector<32x128xbf16>, vector<8x128xf32> -> vector<8x128xf32>
    %c0_7 = arith.constant 0 : index
    %c0_8 = arith.constant 0 : index
    %10 = vector.load %arg2[%c0_7, %c0_8] : memref<8x1xf32, #tpu.memory_space<vmem>>, vector<8x1xf32>
    %11 = vector.broadcast %10 : vector<8x1xf32> to vector<8x128xf32>
    %12 = arith.mulf %9, %11 : vector<8x128xf32>
    %c0_9 = arith.constant 0 : index
    %c0_10 = arith.constant 0 : index
    %13 = vector.load %arg3[%c0_9, %c0_10] : memref<8x1xf32, #tpu.memory_space<vmem>>, vector<8x1xf32>
    %14 = vector.broadcast %13 : vector<8x1xf32> to vector<8x128xf32>
    %15 = arith.addf %12, %14 : vector<8x128xf32>
    %16 = tpu.iota {dimensions = array<i32: 1>} : vector<8x128xi32>
    %c96_i32 = arith.constant 96 : i32
    %17 = vector.broadcast %c96_i32 : i32 to vector<8x128xi32>
    %18 = arith.cmpi slt, %16, %17 : vector<8x128xi32>
    %cst_11 = arith.constant 0.000000e+00 : f32
    %19 = vector.broadcast %cst_11 : f32 to vector<8x128xf32>
    %20 = arith.select %18, %15, %19 : vector<8x128xi1>, vector<8x128xf32>
    %c1_i32 = arith.constant 1 : i32
    %21 = vector.broadcast %c1_i32 : i32 to vector<8x128xi32>
    %22 = arith.cmpi sge, %16, %21 : vector<8x128xi32>
    %c1_i32_12 = arith.constant 1 : i32
    %23 = tpu.dynamic_rotate %20 by %c1_i32_12 dim 1 : vector<8x128xf32>, i32 -> vector<8x128xf32>
    %cst_13 = arith.constant 0.000000e+00 : f32
    %24 = vector.broadcast %cst_13 : f32 to vector<8x128xf32>
    %25 = arith.select %22, %23, %24 : vector<8x128xi1>, vector<8x128xf32>
    %c94_i32 = arith.constant 94 : i32
    %26 = vector.broadcast %c94_i32 : i32 to vector<8x128xi32>
    %27 = arith.cmpi sle, %16, %26 : vector<8x128xi32>
    %c127_i32 = arith.constant 127 : i32
    %28 = tpu.dynamic_rotate %20 by %c127_i32 dim 1 : vector<8x128xf32>, i32 -> vector<8x128xf32>
    %cst_14 = arith.constant 0.000000e+00 : f32
    %29 = vector.broadcast %cst_14 : f32 to vector<8x128xf32>
    %30 = arith.select %27, %28, %29 : vector<8x128xi1>, vector<8x128xf32>
    %c0_15 = arith.constant 0 : index
    %c0_16 = arith.constant 0 : index
    %31 = vector.load %arg4[%c0_15, %c0_16] : memref<8x3xf32, #tpu.memory_space<vmem>>, vector<8x1xf32>
    %32 = vector.broadcast %31 : vector<8x1xf32> to vector<8x128xf32>
    %33 = arith.mulf %32, %25 : vector<8x128xf32>
    %c0_17 = arith.constant 0 : index
    %c1 = arith.constant 1 : index
    %34 = vector.load %arg4[%c0_17, %c1] : memref<8x3xf32, #tpu.memory_space<vmem>>, vector<8x1xf32>
    %35 = vector.broadcast %34 : vector<8x1xf32> to vector<8x128xf32>
    %36 = arith.mulf %35, %20 : vector<8x128xf32>
    %37 = arith.addf %33, %36 : vector<8x128xf32>
    %c0_18 = arith.constant 0 : index
    %c2 = arith.constant 2 : index
    %38 = vector.load %arg4[%c0_18, %c2] : memref<8x3xf32, #tpu.memory_space<vmem>>, vector<8x1xf32>
    %39 = vector.broadcast %38 : vector<8x1xf32> to vector<8x128xf32>
    %40 = arith.mulf %39, %30 : vector<8x128xf32>
    %41 = arith.addf %37, %40 : vector<8x128xf32>
    %c0_19 = arith.constant 0 : index
    %c0_20 = arith.constant 0 : index
    %42 = vector.load %arg5[%c0_19, %c0_20] : memref<8x1xf32, #tpu.memory_space<vmem>>, vector<8x1xf32>
    %43 = vector.broadcast %42 : vector<8x1xf32> to vector<8x128xf32>
    %44 = arith.mulf %41, %43 : vector<8x128xf32>
    %c0_21 = arith.constant 0 : index
    %c0_22 = arith.constant 0 : index
    %45 = vector.load %arg6[%c0_21, %c0_22] : memref<8x1xf32, #tpu.memory_space<vmem>>, vector<8x1xf32>
    %46 = vector.broadcast %45 : vector<8x1xf32> to vector<8x128xf32>
    %47 = arith.addf %44, %46 : vector<8x128xf32>
    %c96_i32_23 = arith.constant 96 : i32
    %48 = vector.broadcast %c96_i32_23 : i32 to vector<8x128xi32>
    %49 = arith.cmpi slt, %16, %48 : vector<8x128xi32>
    %cst_24 = arith.constant 0.000000e+00 : f32
    %50 = vector.broadcast %cst_24 : f32 to vector<8x128xf32>
    %51 = arith.select %49, %47, %50 : vector<8x128xi1>, vector<8x128xf32>
    %c0_25 = arith.constant 0 : index
    %c0_26 = arith.constant 0 : index
    %c0_27 = arith.constant 0 : index
    %52 = vector.load %arg9[%c0_25, %c0_26, %c0_27] : memref<1x16x128xf32, #tpu.memory_space<vmem>>, vector<1x8x128xf32>
    %53 = vector.shape_cast %52 : vector<1x8x128xf32> to vector<8x128xf32>
    %54 = arith.addf %20, %53 : vector<8x128xf32>
    %c0_28 = arith.constant 0 : index
    %c0_29 = arith.constant 0 : index
    %c0_30 = arith.constant 0 : index
    %55 = vector.load %arg10[%c0_28, %c0_29, %c0_30] : memref<1x16x128xf32, #tpu.memory_space<vmem>>, vector<1x8x128xf32>
    %56 = vector.shape_cast %55 : vector<1x8x128xf32> to vector<8x128xf32>
    %57 = vector.shape_cast %54 : vector<8x128xf32> to vector<1x8x128xf32>
    tpu.vector_store %arg10[%c0_28, %c0_29, %c0_30], %57 {strides = array<i32>} : memref<1x16x128xf32, #tpu.memory_space<vmem>>, vector<1x8x128xf32>,
    %c0_31 = arith.constant 0 : index
    %c8 = arith.constant 8 : index
    %c0_32 = arith.constant 0 : index
    %58 = vector.load %arg9[%c0_31, %c8, %c0_32] : memref<1x16x128xf32, #tpu.memory_space<vmem>>, vector<1x8x128xf32>
    %59 = vector.shape_cast %58 : vector<1x8x128xf32> to vector<8x128xf32>
    %60 = arith.addf %51, %59 : vector<8x128xf32>
    %c0_33 = arith.constant 0 : index
    %c8_34 = arith.constant 8 : index
    %c0_35 = arith.constant 0 : index
    %61 = vector.load %arg10[%c0_33, %c8_34, %c0_35] : memref<1x16x128xf32, #tpu.memory_space<vmem>>, vector<1x8x128xf32>
    %62 = vector.shape_cast %61 : vector<1x8x128xf32> to vector<8x128xf32>
    %63 = vector.shape_cast %60 : vector<8x128xf32> to vector<1x8x128xf32>
    tpu.vector_store %arg10[%c0_33, %c8_34, %c0_35], %63 {strides = array<i32>} : memref<1x16x128xf32, #tpu.memory_space<vmem>>, vector<1x8x128xf32>,
    return
  }
  func.func @transform_0(%arg0: i32) -> (i32, i32) {
    %c0_i32 = arith.constant 0 : i32
    %c0_i32_0 = arith.constant 0 : i32
    %c0_i32_1 = arith.constant 0 : i32
    return %c0_i32, %c0_i32_0 : i32, i32
  }
  func.func @transform_1(%arg0: i32) -> (i32, i32) {
    %c0_i32 = arith.constant 0 : i32
    %c0_i32_0 = arith.constant 0 : i32
    %c0_i32_1 = arith.constant 0 : i32
    return %c0_i32, %c0_i32_0 : i32, i32
  }
  func.func @transform_2(%arg0: i32) -> (i32, i32) {
    %c0_i32 = arith.constant 0 : i32
    %c0_i32_0 = arith.constant 0 : i32
    %c0_i32_1 = arith.constant 0 : i32
    return %c0_i32, %c0_i32_0 : i32, i32
  }
  func.func @transform_3(%arg0: i32) -> (i32, i32) {
    %c0_i32 = arith.constant 0 : i32
    %c0_i32_0 = arith.constant 0 : i32
    %c0_i32_1 = arith.constant 0 : i32
    return %c0_i32, %c0_i32_0 : i32, i32
  }
  func.func @transform_4(%arg0: i32) -> (i32, i32) {
    %c0_i32 = arith.constant 0 : i32
    %c0_i32_0 = arith.constant 0 : i32
    %c0_i32_1 = arith.constant 0 : i32
    return %c0_i32, %c0_i32_0 : i32, i32
  }
  func.func @transform_5(%arg0: i32) -> (i32, i32) {
    %c0_i32 = arith.constant 0 : i32
    %c0_i32_0 = arith.constant 0 : i32
    %c0_i32_1 = arith.constant 0 : i32
    return %c0_i32, %c0_i32_0 : i32, i32
  }
  func.func @transform_6(%arg0: i32) -> (i32, i32, i32) {
    %c0_i32 = arith.constant 0 : i32
    %c0_i32_0 = arith.constant 0 : i32
    %c0_i32_1 = arith.constant 0 : i32
    return %arg0, %c0_i32, %c0_i32_0 : i32, i32, i32
  }
  func.func @transform_7(%arg0: i32) -> (i32, i32, i32) {
    %c0_i32 = arith.constant 0 : i32
    %c0_i32_0 = arith.constant 0 : i32
    %c0_i32_1 = arith.constant 0 : i32
    return %arg0, %c0_i32, %c0_i32_0 : i32, i32, i32
  }
  func.func @transform_8(%arg0: i32) -> (i32, i32, i32) {
    %c0_i32 = arith.constant 0 : i32
    %c0_i32_0 = arith.constant 0 : i32
    %c0_i32_1 = arith.constant 0 : i32
    return %arg0, %c0_i32, %c0_i32_0 : i32, i32, i32
  }
  func.func @transform_9(%arg0: i32) -> (i32, i32, i32) {
    %c0_i32 = arith.constant 0 : i32
    %c0_i32_0 = arith.constant 0 : i32
    %c0_i32_1 = arith.constant 0 : i32
    return %arg0, %c0_i32, %c0_i32_0 : i32, i32, i32
  }
}

</mosaic_0001>

<bundles_post_ra>
// kernel: shuffle_ghost_bottleneck.2
= control target key start
LH: loop header
LB: loop body
LE: loop exit
PB: predicated region body
PF: predicated region fallthrough
CT: control target
= control target key end

     0   :  { %s743_s27 = smov 0   ;;  %s826_s0 = inlined_call_operand.vmem [shape: f32[16,16], index: 0, kind: input, shape index: {}]   ;;  %s827_s1 = inlined_call_operand.vmem [shape: f32[16,1], index: 1, kind: input, shape index: {}]   ;;  %s828_s2 = inlined_call_operand.vmem [shape: f32[16,1], index: 2, kind: input, shape index: {}]   ;;  %s829_s3 = inlined_call_operand.vmem [shape: f32[16,3], index: 3, kind: input, shape index: {}]   ;;  %s830_s4 = inlined_call_operand.vmem [shape: f32[16,1], index: 4, kind: input, shape index: {}]   ;;  %s831_s5 = inlined_call_operand.vmem [shape: f32[16,1], index: 5, kind: input, shape index: {}]   ;;  %s832_s6 = inlined_call_operand.vmem [shape: f32[2,16,128], index: 6, kind: input, shape index: {}]   ;;  %s833_s7 = inlined_call_operand.vmem [shape: f32[2,32,128], index: 7, kind: output, shape index: {0}]   ;;  %s834_s8 = inlined_call_operand.vmem [shape: f32[2,32,1], index: 8, kind: output, shape index: {1}]  }
   0x1 LB: > { %s627_s28 = sadd.s32 4294967295, %s689_s27   ;;  %p631_p0 = scmp.ge.s32.totalorder %s689_s27, 1  ;;  %s689_s27 = sphi %s743_s27, %s19_s27  }
   0x2   : > { %p265_p1 = scmp.lt.s32.totalorder %s689_s27, 3 }
   0x4   : > { %p266_p2 = pnand %p631_p0, %p265_p1 }
   0x5   : > { %p304_p3 = scmp.lt.s32.totalorder (!%p266_p2), %s627_s28, 1  ;;  %s696_s15 = smov (!%p266_p2), 127  }
   0x6   : > { %269 = sbr.rel (%p266_p2) target bundleno = 556 (0x22c), region = 48  ;;  %s697_s16 = smov (!%p266_p2), 1  }
   0xb   : > { %v691_v0 = vmov 0.0   ;;  %vm692_vm0 = vmmov 0   ;;  %v385_v1 = vld [vmem:[%s828_s2] sm:$0xff]  ;;  %s836_s28 = smov (!%p304_p3, %s627_s28), 1  ;;  %v693_v3 = vmov 0   ;;  %v386_v4 = vld [vmem:[%s828_s2 + $0x8] sm:$0xff]  ;;  %v417_v40 = vlaneseq }
   0xc   : > { %646 = vmatprep.subr.bf16.mxu0 %v691_v0  ;;  %648 = vmatprep.mubr.msk.bf16.mxu0 %vm692_vm0, %v691_v0  ;;  %v371_v2 = vld [vmem:[%s827_s1] sm:$0xff]  ;;  %s641_s11 = sshll.u32 %s836_s28, 4  ;;  %v372_v5 = vld [vmem:[%s827_s1 + $0x8] sm:$0xff]  ;;  %vm326_vm1 = vcmask 130048   ;;  %v694_v14 = vmov 1   ;;  %v695_v15 = vmov 2  }
   0xd   : > { %668 = vset.pattern.permute.xlu1 %v693_v3  ;;  %667 = vset.pattern.permute.xlu0 %v693_v3  ;;  %s308_s18 = scalar_lea.vmem %s832_s6, %s641_s11  ;;  %v322_v6 = vld [vmem:[%s826_s0] sm:$0xff]  ;;  %v323_v7 = vld [vmem:[%s826_s0 + $0x8] sm:$0xff]  ;;  %v787_v42 = vand.u32 127, %v417_v40  ;;  %s642_s11 = sshll.u32 %s836_s28, 5  ;;  %vm530_vm5 = vcmask 7168  }
   0xe   : > { %389 = vperm.xlu1 %668, %v385_v1   ;;  %375 = vperm.xlu0 %667, %v371_v2   ;;  %v320_v8 = vld [vmem:[%s308_s18] sm:$0xff]  ;;  %v321_v9 = vld [vmem:[%s308_s18 + $0x8] sm:$0xff]  ;;  %v324_v11 = vpack.c.bf16 %v323_v7, %v322_v6  ;;  %s796_s14 = scalar_lea.vmem %s833_s7, %s642_s11  ;;  %s318_s23 = scalar_lea.vmem %s834_s8, %s642_s11 }
   0xf   : > { %v325_v10 = vpack.c.bf16 %v321_v9, %v320_v8  ;;  %v437_v12 = vld [vmem:[%s829_s3 + $0x8] sm:$0xff]  ;;  %v436_v13 = vld [vmem:[%s829_s3] sm:$0xff]  ;;  %vm419_vm2 = vcmp.lt.s32.totalorder %v787_v42, 96  ;;  %vm422_vm3 = vcmp.ge.s32.totalorder %v787_v42, 1  ;;  %vm429_vm4 = vcmp.le.s32.totalorder %v787_v42, 94 }
  0x10   : > { %v475_v16 = vld [vmem:[%s830_s4 + $0x8] sm:$0xff]  ;;  %v474_v17 = vld [vmem:[%s830_s4] sm:$0xff] }
  0x11   : > { %647 = vmatpush3.bf16.msra.mxu0 %v325_v10  ;;  %v489_v51 = vld [vmem:[%s831_s5 + $0x8] sm:$0xff]  ;;  %v488_v53 = vld [vmem:[%s831_s5] sm:$0xff] }
  0x12   : > { %394 = vperm.xlu1 %668, %v386_v4   ;;  %380 = vperm.xlu0 %667, %v372_v5  }
  0x14   : > { %649 = vmatmul.mubr.msk.bf16.vlgmr.msra.gmra.mxu0 %vm326_vm1, %v324_v11 }
  0x16   : > { %445 = vperm.xlu1 %668, %v437_v12   ;;  %669 = vset.pattern.permute.xlu0 %v694_v14 }
  0x17   : > { %451 = vperm.xlu0 %669, %v436_v13  }
  0x1a   : > { %670 = vset.pattern.permute.xlu1 %v694_v14 }
  0x1b   : > { %455 = vperm.xlu1 %670, %v437_v12   ;;  %672 = vset.pattern.permute.xlu0 %v695_v15 }
  0x1c   : > { %467 = vperm.xlu0 %672, %v437_v12  }
  0x1f   : > { %671 = vset.pattern.permute.xlu1 %v695_v15 }
  0x20   : > { %463 = vperm.xlu1 %671, %v436_v13   ;;  %673 = vset.pattern.permute.xlu0 %v693_v3 }
  0x21   : > { %440 = vperm.xlu0 %673, %v436_v13  }
  0x24   : > { %674 = vset.pattern.permute.xlu1 %v693_v3 }
  0x25   : > { %483 = vperm.xlu1 %674, %v475_v16   ;;  %478 = vperm.xlu0 %673, %v474_v17  }
  0x89   : > { %v376_v18 = vpop.permute.xlu0 %375  ;;  %v390_v19 = vpop.permute.xlu1 %389 }
  0x8d   : > { %v381_v24 = vpop.permute.xlu0 %380  ;;  %v395_v28 = vpop.permute.xlu1 %394 }
  0x91   : > { %v446_v54 = vpop.permute.xlu1 %445 }
  0x92   : > { %v452_v56 = vpop.permute.xlu0 %451 }
  0x96   : > { %v456_v55 = vpop.permute.xlu1 %455 }
  0x97   : > { %v468_v58 = vpop.permute.xlu0 %467 }
  0x9b   : > { %v464_v57 = vpop.permute.xlu1 %463 }
  0x9c   : > { %v441_v60 = vpop.permute.xlu0 %440 }
  0xa0   : > { %v484_v59 = vpop.permute.xlu1 %483  ;;  %v479_v62 = vpop.permute.xlu0 %478 }
  0xd4   : > { %v364_v20 = vpop.f32.mrf.mxu0 }
  0xd5   : > { %v383_v21 = vmul.f32 %v376_v18, %v364_v20 }
  0xd6   : > { %v650_v22 = vpop.f32.mrf.mxu0 }
  0xd7   : > { %v397_v23 = vadd.f32 %v390_v19, %v383_v21 }
  0xd8   : > { %v367_v25 = vpop.f32.mrf.mxu0 }
  0xd9   : > { %v399_v26 = vmul.f32 %v397_v23, %v397_v23  ;;  %v384_v27 = vmul.f32 %v381_v24, %v367_v25 }
  0xda   : > { %v651_v29 = vpop.f32.mrf.mxu0 }
  0xdb   : > { %v401_v30 = vmul.f32 %v399_v26, %v397_v23  ;;  %v398_v31 = vadd.f32 %v395_v28, %v384_v27 }
  0xdd   : > { %v403_v32 = vmul.f32 0.044715, %v401_v30  ;;  %v400_v33 = vmul.f32 %v398_v31, %v398_v31 }
  0xdf   : > { %v405_v34 = vadd.f32 %v403_v32, %v397_v23  ;;  %v402_v35 = vmul.f32 %v400_v33, %v398_v31 }
  0xe1   : > { %v407_v36 = vmul.f32 0.7978846, %v405_v34  ;;  %v404_v37 = vmul.f32 0.044715, %v402_v35 }
  0xe3   : > { %675 = vtanh.f32 %v407_v36  ;;  %v406_v38 = vadd.f32 %v404_v37, %v398_v31 }
  0xe5   : > { %v408_v39 = vmul.f32 0.7978846, %v406_v38 }
  0xe7   : > { %677 = vtanh.f32 %v408_v39 }
  0xf0   : > { %v676_v41 = vpop.eup %675 }
  0xf1   : > { %v411_v43 = vadd.f32 1.0, %v676_v41 }
  0xf3   : > { %v413_v44 = vmul.f32 0.5, %v411_v43 }
  0xf4   : > { %v678_v45 = vpop.eup %677 }
  0xf5   : > { %v415_v46 = vmul.f32 %v413_v44, %v397_v23  ;;  %v412_v47 = vadd.f32 1.0, %v678_v45 }
  0xf7   : > { %v420_v48 = vsel %vm419_vm2, %v415_v46, 0.0  ;;  %v414_v49 = vmul.f32 0.5, %v412_v47 }
  0xf8   : > { %430 = vrot.lane.b32.xlu0 %v420_v48, %s696_s15  ;;  %423 = vrot.lane.b32.xlu1 %v420_v48, %s697_s16  ;;  %522 = vst [vmem:[%s796_s14] sm:$0xff] %v420_v48  ;;  %v458_v8 = vmul.f32 %v452_v56, %v420_v48 }
  0xf9   : > { %v416_v50 = vmul.f32 %v414_v49, %v398_v31 }
  0xfb   : > { %v421_v52 = vsel %vm419_vm2, %v416_v50, 0.0 }
  0xfc   : > { %497 = vperm.xlu0 %673, %v489_v51   ;;  %425 = vrot.lane.b32.xlu1 %v421_v52, %s697_s16  ;;  %523 = vst [vmem:[%s796_s14 + $0x8] sm:$0xff] %v421_v52  ;;  %v459_v3 = vmul.f32 %v456_v55, %v421_v52 }
 0x100   : > { %432 = vrot.lane.b32.xlu1 %v421_v52, %s696_s15 }
 0x104   : > { %492 = vperm.xlu1 %674, %v488_v53  }
 0x11b   : > { %528 = vadd.xlane.f32.xlu0 %v421_v52 }
 0x128   : > { %526 = vadd.xlane.f32.xlu1 %v420_v48 }
 0x16a   : > { %v424_v61 = vpop.permute.xlu1 %423  ;;  %v431_v4 = vpop.permute.xlu0 %430 }
 0x16b   : > { %v427_v0 = vsel %vm422_vm3, %v424_v61, 0.0  ;;  %v434_v11 = vsel %vm429_vm4, %v431_v4, 0.0 }
 0x16c   : > { %v448_v5 = vmul.f32 %v441_v60, %v427_v0  ;;  %v470_v14 = vmul.f32 %v464_v57, %v434_v11 }
 0x16e   : > { %v426_v63 = vpop.permute.xlu1 %425  ;;  %v460_v12 = vadd.f32 %v458_v8, %v448_v5 }
 0x16f   : > { %v428_v1 = vsel %vm422_vm3, %v426_v63, 0.0 }
 0x170   : > { %v449_v2 = vmul.f32 %v446_v54, %v428_v1  ;;  %v472_v18 = vadd.f32 %v470_v14, %v460_v12 }
 0x172   : > { %v433_v6 = vpop.permute.xlu1 %432  ;;  %v461_v9 = vadd.f32 %v459_v3, %v449_v2  ;;  %v486_v21 = vmul.f32 %v479_v62, %v472_v18 }
 0x173   : > { %v435_v7 = vsel %vm429_vm4, %v433_v6, 0.0 }
 0x174   : > { %v471_v10 = vmul.f32 %v468_v58, %v435_v7 }
 0x176   : > { %v473_v13 = vadd.f32 %v471_v10, %v461_v9 }
 0x177   : > { %v498_v16 = vpop.permute.xlu0 %497 }
 0x178   : > { %v487_v15 = vmul.f32 %v484_v59, %v473_v13 }
 0x17a   : > { %v501_v17 = vadd.f32 %v498_v16, %v487_v15 }
 0x17c   : > { %v503_v19 = vmul.f32 %v501_v17, %v501_v17 }
 0x17e   : > { %v505_v20 = vmul.f32 %v503_v19, %v501_v17 }
 0x17f   : > { %v493_v22 = vpop.permute.xlu1 %492 }
 0x180   : > { %v507_v23 = vmul.f32 0.044715, %v505_v20  ;;  %v500_v24 = vadd.f32 %v493_v22, %v486_v21 }
 0x182   : > { %v509_v25 = vadd.f32 %v507_v23, %v501_v17  ;;  %v502_v26 = vmul.f32 %v500_v24, %v500_v24 }
 0x184   : > { %v504_v27 = vmul.f32 %v502_v26, %v500_v24  ;;  %v511_v28 = vmul.f32 0.7978846, %v509_v25 }
 0x186   : > { %v506_v29 = vmul.f32 0.044715, %v504_v27  ;;  %679 = vtanh.f32 %v511_v28 }
 0x188   : > { %v508_v30 = vadd.f32 %v506_v29, %v500_v24 }
 0x18a   : > { %v510_v31 = vmul.f32 0.7978846, %v508_v30 }
 0x18c   : > { %681 = vtanh.f32 %v510_v31 }
 0x193   : > { %v680_v32 = vpop.eup %679 }
 0x194   : > { %v515_v33 = vadd.f32 1.0, %v680_v32 }
 0x196   : > { %v517_v34 = vmul.f32 0.5, %v515_v33 }
 0x198   : > { %v519_v35 = vmul.f32 %v517_v34, %v501_v17 }
 0x199   : > { %v682_v36 = vpop.eup %681 }
 0x19a   : > { %v521_v37 = vsel %vm419_vm2, %v519_v35, 0.0  ;;  %v514_v38 = vadd.f32 1.0, %v682_v36 }
 0x19b   : > { %535 = vadd.xlane.f32.xlu1 %v521_v37  ;;  %525 = vst [vmem:[%s796_s14 + $0x18] sm:$0xff] %v521_v37 }
 0x19c   : > { %v516_v39 = vmul.f32 0.5, %v514_v38 }
 0x19e   : > { %v518_v40 = vmul.f32 %v516_v39, %v500_v24 }
 0x1a0   : > { %v520_v41 = vsel %vm419_vm2, %v518_v40, 0.0 }
 0x1a1   : > { %533 = vadd.xlane.f32.xlu0 %v520_v41  ;;  %524 = vst [vmem:[%s796_s14 + $0x10] sm:$0xff] %v520_v41 }
 0x1a4   : > { %v529_v43 = vpop.xlane.xlu0 %528 }
 0x1a5   : > { %532 = vst.msk [vmem:[%s318_s23 + $0x8] sm:$0xff] %vm530_vm5, %v529_v43 }
 0x1b1   : > { %v527_v44 = vpop.xlane.xlu1 %526 }
 0x1b2   : > { %531 = vst.msk [vmem:[%s318_s23] sm:$0xff] %vm530_vm5, %v527_v44 }
 0x224   : > { %v536_v45 = vpop.xlane.xlu1 %535 }
 0x225   : > { %538 = vst.msk [vmem:[%s318_s23 + $0x18] sm:$0xff] %vm530_vm5, %v536_v45 }
 0x22a   : > { %v534_v46 = vpop.xlane.xlu0 %533 }
 0x22b   : > { %537 = vst.msk [vmem:[%s318_s23 + $0x10] sm:$0xff] %vm530_vm5, %v534_v46 }
 0x22c PF: > { %s19_s27 = sadd.s32 1, %s689_s27  }
 0x22d   : > { %p16_p4 = scmp.ge.s32.totalorder %s19_s27, 4  }
 0x22f   :  { %18 = sbr.rel (!%p16_p4) target bundleno = 1 (0x1), region = 90 }

// kernel: shuffle_ghost_bottleneck.3
= control target key start
LH: loop header
LB: loop body
LE: loop exit
PB: predicated region body
PF: predicated region fallthrough
CT: control target
= control target key end

     0   :  { %14 = vsyncpa [#allocation3], 0  ;;  %s971_s0 = inlined_call_operand.vmem [shape: f32[8,32], index: 0, kind: input, shape index: {}]   ;;  %s972_s1 = inlined_call_operand.vmem [shape: f32[8,1], index: 1, kind: input, shape index: {}]   ;;  %s973_s2 = inlined_call_operand.vmem [shape: f32[8,1], index: 2, kind: input, shape index: {}]   ;;  %s974_s3 = inlined_call_operand.vmem [shape: f32[8,3], index: 3, kind: input, shape index: {}]   ;;  %s975_s4 = inlined_call_operand.vmem [shape: f32[8,1], index: 4, kind: input, shape index: {}]   ;;  %s976_s5 = inlined_call_operand.vmem [shape: f32[8,1], index: 5, kind: input, shape index: {}]   ;;  %s977_s6 = inlined_call_operand.vmem [shape: f32[2,32,128], index: 6, kind: input, shape index: {}]   ;;  %s978_s7 = inlined_call_operand.vmem [shape: f32[2,32,1], index: 7, kind: input, shape index: {}]   ;;  %s979_s8 = inlined_call_operand.vmem [shape: f32[2,16,128], index: 8, kind: input, shape index: {}]   ;;  %s980_s9 = inlined_call_operand.hbm [shape: f32[2,16,128], index: 9, kind: output, shape index: {}]  }
   0x1   :  { %16 = vsyncpa [#allocation3 + $0x1], 0  ;;  %s826_s30 = smov 0   ;;  %s828_s10 = smov 0  }
   0x2   :  { %s830_s11 = smov 0   ;;  %s832_s12 = smov 0  }
   0x3 LB: > { %s847_s13 = sadd.s32 4294967295, %s764_s12   ;;  %s618_s14 = sadd.s32 4294967294, %s764_s12   ;;  %s764_s12 = sphi %s832_s12, %s986_s12   ;;  %s760_s11 = sphi %s830_s11, %s985_s11   ;;  %s756_s10 = sphi %s828_s10, %s984_s10   ;;  %s752_s30 = sphi %s826_s30, %s983_s30  }
   0x4   : > { %s851_s15 = sadd.s32 1, %s764_s12   ;;  %s233_s16 = sadd.s32 1, %s760_s11 }
   0x5   : > { %s230_s17 = ssub.s32 %s764_s12, %s851_s15  ;;  %p243_p0 = scmp.ne.s32.totalorder %s760_s11, %s756_s10 }
   0x6   : > { %p231_p1 = scmp.eq.s32.totalorder %s230_s17, 0  ;;  %p244_p2 = scmp.eq.s32.totalorder %s847_s13, 1 }
   0x7   : > { %p249_p3 = scmp.ne.s32.totalorder %s756_s10, %s752_s30  ;;  %p250_p4 = scmp.eq.s32.totalorder %s618_s14, 1 }
   0x8   : > { %s862_s18 = scalar_select %p231_p1, %s760_s11, %s233_s16  }
   0x9   : > { %p864_p5 = por %p244_p2, %p243_p0  ;;  %p868_p6 = por %p250_p4, %p249_p3 }
   0xa   : > { %p621_p7 = scmp.ge.s32.totalorder %s764_s12, 1  ;;  %p310_p8 = scmp.lt.s32.totalorder %s764_s12, 3 }
   0xc   : > { %p311_p9 = pnand %p621_p7, %p310_p8 }
   0xd   : > { %p356_p10 = scmp.lt.s32.totalorder (!%p311_p9), %s847_s13, 1  ;;  %s353_s29 = sand.u32 (!%p311_p9), 1, %s756_s10  }
   0xe   : > { %314 = sbr.rel (%p311_p9) target bundleno = 512 (0x200), region = 56  ;;  %s622_s23 = sshll.u32 (!%p311_p9), %s353_s29, 4 }
  0x13   : > { %v766_v0 = vmov 0   ;;  %s876_s21 = scalar_select %p356_p10, %s847_s13, 1  ;;  %v767_v5 = vmov 0.0   ;;  %v452_v6 = vld [vmem:[%s972_s1] sm:$0xff]  ;;  %vm768_vm0 = vmmov 0   ;;  %v769_v9 = vmov 1  }
  0x14   : > { %699 = vset.pattern.permute.xlu1 %v766_v0  ;;  %698 = vset.pattern.permute.xlu0 %v766_v0  ;;  %v459_v7 = vld [vmem:[%s973_s2] sm:$0xff]  ;;  %v770_v10 = vmov 2   ;;  %vm408_vm1 = vcmask 261120   ;;  %v466_v28 = vlaneseq }
  0x15   : > { %s635_s22 = sshll.u32 %s876_s21, 5  ;;  %642 = vmatprep.subr.bf16.mxu0 %v767_v5  ;;  %v478_v8 = vld [vmem:[%s974_s3] sm:$0xff]  ;;  %646 = vmatprep.mubr.msk.bf16.mxu0 %vm768_vm0, %v767_v5  ;;  %s637_s28 = sshll.u32 %s876_s21, 4 }
  0x16   : > { %s365_s25 = scalar_lea.vmem %s978_s7, %s635_s22  ;;  %s360_s24 = scalar_lea.vmem %s977_s6, %s635_s22  ;;  %v404_v24 = vld [vmem:[%s971_s0] sm:$0xff]  ;;  %v467_v29 = vand.u32 127, %v466_v28 }
  0x17   : > { %v378_v1 = vld [vmem:[%s365_s25 + $0x10] sm:$0xff]  ;;  %v376_v2 = vld [vmem:[%s365_s25] sm:$0xff]  ;;  %v379_v3 = vld [vmem:[%s365_s25 + $0x18] sm:$0xff]  ;;  %v405_v26 = vpack.c.bf16 %v404_v24, %v404_v24  ;;  %s905_s17 = scalar_lea.vmem %s979_s8, %s637_s28  ;;  %s771_s21 = smov 1  }
  0x18   : > { %392 = vperm.xlu0 %698, %v378_v1   ;;  %382 = vperm.xlu1 %699, %v376_v2   ;;  %v377_v4 = vld [vmem:[%s365_s25 + $0x8] sm:$0xff]  ;;  %v374_v13 = vld [vmem:[%s360_s24 + $0x10] sm:$0xff]  ;;  %v375_v14 = vld [vmem:[%s360_s24 + $0x18] sm:$0xff]  ;;  %vm468_vm2 = vcmp.lt.s32.totalorder %v467_v29, 96  ;;  %s772_s25 = smov 127   ;;  %vm470_vm3 = vcmp.ge.s32.totalorder %v467_v29, 1 }
  0x19   : > { %v372_v15 = vld [vmem:[%s360_s24] sm:$0xff]  ;;  %v373_v18 = vld [vmem:[%s360_s24 + $0x8] sm:$0xff]  ;;  %s911_s24 = scalar_lea.vmem [#allocation2], %s622_s23  ;;  %vm474_vm4 = vcmp.le.s32.totalorder %v467_v29, 94  ;;  %s638_s28 = sshll.u32 %s847_s13, 8 }
  0x1a   : > { %v497_v27 = vld [vmem:[%s975_s4] sm:$0xff]  ;;  %s532_s27 = sshll.u32 %s911_s24, 4  ;;  %v515_v57 = vld [vmem:[%s905_s17 + $0x8] sm:$0xff]  ;;  %s926_s23 = scalar_lea.hbm %s980_s9, %s638_s28  ;;  %s921_s27 = int_to_ptr.vmem [resolvable:$true] %s532_s27 }
  0x1b   : > { %v512_v36 = vld [vmem:[%s905_s17] sm:$0xff]  ;;  %s704_s13 = scalar_lea.vmem %s921_s27, 256  ;;  %s773_s17 = smov [#allocation2]  }
  0x1c   : > { %397 = vperm.xlu0 %698, %v379_v3   ;;  %387 = vperm.xlu1 %699, %v377_v4   ;;  %v504_v41 = vld [vmem:[%s976_s5] sm:$0xff]  ;;  %p705_p11 = scmp.ne.s32.totalorder %s921_s27, %s704_s13 }
  0x1e   : > { %p706_p12 = pnand %p705_p11, %p864_p5 }
  0x20   : > { %455 = vperm.xlu0 %698, %v452_v6   ;;  %462 = vperm.xlu1 %699, %v459_v7   ;;  %p707_p13 = pneg %p706_p12 }
  0x24   : > { %481 = vperm.xlu0 %698, %v478_v8   ;;  %700 = vset.pattern.permute.xlu1 %v769_v9 }
  0x25   : > { %486 = vperm.xlu1 %700, %v478_v8  }
  0x28   : > { %701 = vset.pattern.permute.xlu0 %v770_v10 }
  0x29   : > { %492 = vperm.xlu0 %701, %v478_v8   ;;  %703 = vset.pattern.permute.xlu1 %v766_v0 }
  0x2d   : > { %702 = vset.pattern.permute.xlu0 %v766_v0 }
  0x2e   : > { %500 = vperm.xlu0 %702, %v497_v27  }
  0x93   : > { %v393_v11 = vpop.permute.xlu0 %392  ;;  %v383_v12 = vpop.permute.xlu1 %382 }
  0x94   : > { %v402_v19 = vmul.f32 %v393_v11, %v374_v13  ;;  %v400_v21 = vmul.f32 %v383_v12, %v372_v15 }
  0x97   : > { %v398_v16 = vpop.permute.xlu0 %397  ;;  %v388_v17 = vpop.permute.xlu1 %387 }
  0x98   : > { %v403_v20 = vmul.f32 %v398_v16, %v375_v14  ;;  %v401_v22 = vmul.f32 %v388_v17, %v373_v18 }
  0x9a   : > { %v407_v23 = vpack.c.bf16 %v403_v20, %v402_v19  ;;  %v406_v25 = vpack.c.bf16 %v401_v22, %v400_v21 }
  0x9b   : > { %v456_v30 = vpop.permute.xlu0 %455  ;;  %v463_v33 = vpop.permute.xlu1 %462 }
  0x9c   : > { %643 = vmatpush3.bf16.msra.mxu0 %v407_v23 }
  0x9d   : > { %644 = vmatprep.subr.bf16.mxu0 %v767_v5 }
  0x9f   : > { %v482_v44 = vpop.permute.xlu0 %481 }
  0xa0   : > { %645 = vmatpush3.bf16.msra.mxu0 %v406_v25  ;;  %v487_v42 = vpop.permute.xlu1 %486 }
  0xa3   : > { %647 = vmatmul.mubr.msk.bf16.vlgmr.msra.gmra.mxu0 %vm408_vm1, %v405_v26 }
  0xa4   : > { %v493_v48 = vpop.permute.xlu0 %492 }
  0xa9   : > { %v501_v54 = vpop.permute.xlu0 %500 }
 0x163   : > { %v446_v31 = vpop.f32.mrf.mxu0 }
 0x164   : > { %v458_v32 = vmul.f32 %v456_v30, %v446_v31 }
 0x165   : > { %v648_v34 = vpop.f32.mrf.mxu0 }
 0x166   : > { %v465_v35 = vadd.f32 %v463_v33, %v458_v32 }
 0x167   : > { %v449_v37 = vpop.f32.mrf.mxu0 }
 0x168   : > { %v469_v38 = vsel %vm468_vm2, %v465_v35, 0.0 }
 0x169   : > { %471 = vrot.lane.b32.xlu1 %v469_v38, %s771_s21  ;;  %v649_v39 = vpop.f32.mrf.mxu0  ;;  %v513_v40 = vadd.f32 %v512_v36, %v469_v38  ;;  %v489_v50 = vmul.f32 %v487_v42, %v469_v38  ;;  %s931_s21 = scalar_lea.sflag [#allocation3], %s353_s29 }
 0x16b   : > { %514 = vst [vmem:[%s911_s24] sm:$0xff] %v513_v40 }
 0x16d   : > { %475 = vrot.lane.b32.xlu1 %v469_v38, %s772_s25  ;;  %s708_s25 = sshll.u32 %s773_s17, 4  ;;  %s709_s25 = int_to_ptr.vmem [resolvable:$false] %s708_s25 }
 0x16e   : > { %s710_s26 = scalar_lea.vmem %s709_s25, 512  ;;  %p711_p0 = scmp.lt.s32.totalorder %s921_s27, %s709_s25 }
 0x16f   : > { %p712_p1 = scmp.lt.s32.totalorder %s710_s26, %s704_s13 }
 0x171   : > { %507 = vperm.xlu1 %703, %v504_v41   ;;  %p713_p2 = por %p712_p1, %p711_p0 }
 0x173   : > { %p714_p3 = pnand %p713_p2, %p707_p13 }
 0x1db   : > { %v472_v43 = vpop.permute.xlu1 %471 }
 0x1dc   : > { %v473_v45 = vsel %vm470_vm3, %v472_v43, 0.0 }
 0x1dd   : > { %v484_v49 = vmul.f32 %v482_v44, %v473_v45 }
 0x1df   : > { %v476_v46 = vpop.permute.xlu1 %475  ;;  %v490_v52 = vadd.f32 %v489_v50, %v484_v49 }
 0x1e0   : > { %v477_v47 = vsel %vm474_vm4, %v476_v46, 0.0 }
 0x1e1   : > { %v495_v51 = vmul.f32 %v493_v48, %v477_v47 }
 0x1e3   : > { %v496_v53 = vadd.f32 %v495_v51, %v490_v52 }
 0x1e5   : > { %v503_v55 = vmul.f32 %v501_v54, %v496_v53 }
 0x1ec   : > { %v508_v56 = vpop.permute.xlu1 %507 }
 0x1ed   : > { %v510_v58 = vadd.f32 %v508_v56, %v503_v55 }
 0x1ef   : > { %v511_v59 = vsel %vm468_vm2, %v510_v58, 0.0 }
 0x1f0   : > { %v516_v60 = vadd.f32 %v515_v57, %v511_v59 }
 0x1f2   : > { %517 = vst [vmem:[%s911_s24 + $0x8] sm:$0xff] %v516_v60 }
 0x1f3   : > { %717 = shalt.err (!%p714_p3)
}
 0x1f4   : > { %s718_s29 = scalar_lea.hbm %s926_s23, 256  ;;  %s722_s28 = scalar_lea.hbm %s980_s9, 512 }
 0x1f5   : > { %p719_p4 = scmp.ne.s32.totalorder %s926_s23, %s718_s29  ;;  %p723_p9 = scmp.lt.s32.totalorder %s926_s23, %s980_s9 }
 0x1f6   : > { %p724_p10 = scmp.lt.s32.totalorder %s722_s28, %s718_s29 }
 0x1f7   : > { %p720_p7 = pnand %p719_p4, %p864_p5 }
 0x1f8   : > { %p725_p11 = por %p724_p10, %p723_p9 }
 0x1f9   : > { %p721_p8 = pneg %p720_p7 }
 0x1fb   : > { %p726_p12 = pnand %p725_p11, %p721_p8 }
 0x1fd   : > { %729 = shalt.err (!%p726_p12)
}
 0x1fe   : > { %s774_s13 = smov 128   ;;  %s775_s17 = smov 8  }
 0x1ff   : > { %650 = dma.vmem_to_hbm [thread:$0]  (%p864_p5), %s921_s27, 256, %s926_s23, %s931_s21, %s774_s13, %s774_s13, %s775_s17  }
 0x200 PF: > { %p656_p13 = scmp.ge.s32.totalorder %s764_s12, 2  ;;  %s547_s25 = sand.u32 1, %s752_s30  }
 0x201   : > { %s548_s26 = scalar_lea.sflag [#allocation3], %s547_s25 }
 0x202   : > { %p653_p0 = pnand %p656_p13, %p868_p6 }
 0x204   : > { %p654_p1 = pneg %p653_p0 }
 0x206   : > { %747 = dma.done.wait (%p654_p1), %s548_s26, 256  }
 0x207   : > { %749 = vsyncadd (%p654_p1), %s548_s26, 4294967040  ;;  %p19_p2 = scmp.ge.s32.totalorder %s851_s15, 4   ;;  %s983_s30 = smov %s756_s10 }
 0x208   : > { %s984_s10 = smov %s760_s11  ;;  %s985_s11 = smov %s862_s18 }
 0x209   : > { %s986_s12 = smov %s851_s15  ;;  %21 = sbr.rel (!%p19_p2) target bundleno = 3 (0x3), region = 97 }
 0x20e   :  { %553 = vsyncpa [#allocation3], 1 }
 0x20f   :  { %555 = vsyncpa [#allocation3 + $0x1], 1 }

</bundles_post_ra>
